<compile_context>
chip_gen: v6e
topology: v6e:2x2x1
jax: 0.10.0
libtpu: 0.0.40
codegen_flags: <defaults>
</compile_context>

<pallas_src>
import functools

import jax
import jax.numpy as jnp
from jax.experimental import pallas as pl
from jax.experimental.pallas import tpu as pltpu

EPS = 1e-5  # nn.BatchNorm2d default eps


def _round_up(x, m):
    return (x + m - 1) // m * m


# ----------------------------------------------------------------------------
# Tiled MXU matmul
# ----------------------------------------------------------------------------
def _matmul_kernel(a_ref, b_ref, o_ref):
    # Accumulate in f32 directly into the VMEM-resident output block; the block
    # index is constant along k, so it is written back to HBM only once.
    @pl.when(pl.program_id(2) == 0)
    def _():
        o_ref[...] = jnp.zeros_like(o_ref)

    o_ref[...] += jnp.dot(a_ref[...], b_ref[...],
                          preferred_element_type=jnp.float32)


def matmul_pallas(a, b, tile_m=256, tile_n=256, max_single_k=4608):
    """(M, K) @ (K, N) -> (M, N) f32.  Operands may be bf16 (MXU fast path)."""
    M0, K = a.shape
    K2, N = b.shape
    assert K == K2
    if M0 < 8:                              # guarantee at least one sublane tile
        a = jnp.pad(a, ((0, 8 - M0), (0, 0)))
    M = a.shape[0]
    tm = min(tile_m, (M // 8) * 8)
    tn = min(tile_n, N) if N % 128 == 0 else N   # full-N block for ragged N
    if K <= max_single_k:
        tk = K                                   # single K step, no padding
    else:                                        # rare fallback: split K
        tk = 2048
        Kp = _round_up(K, tk)
        a = jnp.pad(a, ((0, 0), (0, Kp - K)))
        b = jnp.pad(b, ((0, Kp - K), (0, 0)))
        K = Kp
    out = pl.pallas_call(
        _matmul_kernel,
        out_shape=jax.ShapeDtypeStruct((M, N), jnp.float32),
        grid=(pl.cdiv(M, tm), pl.cdiv(N, tn), K // tk),
        in_specs=[pl.BlockSpec((tm, tk), lambda i, j, k: (i, k)),
                  pl.BlockSpec((tk, tn), lambda i, j, k: (k, j))],
        out_specs=pl.BlockSpec((tm, tn), lambda i, j, k: (i, j)),
        compiler_params=pltpu.CompilerParams(
            dimension_semantics=("parallel", "parallel", "arbitrary")),
    )(a, b)
    return out if M == M0 else out[:M0]


# ----------------------------------------------------------------------------
# Convolution = (optional im2col) + matmul
# ----------------------------------------------------------------------------
def conv2d_pallas(x, w, stride, pad):
    """x: NHWC f32, w: (KH, KW, Cin, Cout) f32 -> (flat (M, Cout) f32, NHWC shape)."""
    N, H, W, Cin = x.shape
    KH, KW, _, Cout = w.shape
    OH = (H + 2 * pad - KH) // stride + 1
    OW = (W + 2 * pad - KW) // stride + 1
    xb = x.astype(jnp.bfloat16)                      # bf16 operands for the MXU
    if KH == 1 and KW == 1 and pad == 0:
        a = xb if stride == 1 else xb[:, ::stride, ::stride, :]
        a = a.reshape(N * OH * OW, Cin)
    else:
        xp = jnp.pad(xb, ((0, 0), (pad, pad), (pad, pad), (0, 0)))
        cols = [xp[:, dy:dy + stride * OH:stride, dx:dx + stride * OW:stride, :]
                for dy in range(KH) for dx in range(KW)]
        a = jnp.concatenate(cols, axis=-1).reshape(N * OH * OW, KH * KW * Cin)
    b = w.reshape(KH * KW * Cin, Cout).astype(jnp.bfloat16)
    out = matmul_pallas(a, b)
    return out, (N, OH, OW, Cout)


# ----------------------------------------------------------------------------
# BatchNorm (batch stats) + ReLU (+ residual), tiled & lane-dense
# ----------------------------------------------------------------------------
def _fold_cols(arr2d):
    """Reshape (M, C) -> (M/f, C*f) with C*f == 128 when C < 128 (free bitcast)."""
    M, C = arr2d.shape
    if C < 128 and 128 % C == 0:
        f = 128 // C
        if M % f == 0:
            return arr2d.reshape(M // f, C * f), f
    return arr2d, 1


def _row_tile(Mf, Cf, target_bytes=2 << 20):
    cap = (target_bytes // (Cf * 4)) // 8 * 8
    cap = max(8, min(4096, cap))
    return Mf if Mf <= cap else cap


def _colstats_kernel(x_ref, s_ref, ss_ref, *, tm, m_total):
    i = pl.program_id(0)

    @pl.when(i == 0)
    def _():
        s_ref[...] = jnp.zeros_like(s_ref)
        ss_ref[...] = jnp.zeros_like(ss_ref)

    x = x_ref[...]
    if m_total % tm != 0:  # mask the ragged tail block
        rows = i * tm + jax.lax.broadcasted_iota(jnp.int32, x.shape, 0)
        x = jnp.where(rows < m_total, x, 0.0)
    s_ref[...] += jnp.sum(x, axis=0, keepdims=True)
    ss_ref[...] += jnp.sum(x * x, axis=0, keepdims=True)


def _column_stats(xf):
    """Single-pass per-column sum and sum-of-squares of a (Mf, Cf) f32 slab."""
    Mf, Cf = xf.shape
    if Mf < 8:  # tiny slab: plain JAX is cheaper than a kernel launch
        return jnp.sum(xf, axis=0), jnp.sum(xf * xf, axis=0)
    tm = _row_tile(Mf, Cf, target_bytes=1 << 20)
    s, ss = pl.pallas_call(
        functools.partial(_colstats_kernel, tm=tm, m_total=Mf),
        out_shape=(jax.ShapeDtypeStruct((1, Cf), jnp.float32),
                   jax.ShapeDtypeStruct((1, Cf), jnp.float32)),
        grid=(pl.cdiv(Mf, tm),),
        in_specs=[pl.BlockSpec((tm, Cf), lambda i: (i, 0))],
        out_specs=(pl.BlockSpec((1, Cf), lambda i: (0, 0)),
                   pl.BlockSpec((1, Cf), lambda i: (0, 0))),
        compiler_params=pltpu.CompilerParams(
            dimension_semantics=("arbitrary",)),
    )(xf)
    return s[0], ss[0]


def _bn_scale_shift(x2d, gamma, beta):
    M, C = x2d.shape
    xf, f = _fold_cols(x2d)
    s, ss = _column_stats(xf)
    if f > 1:
        s = s.reshape(f, C).sum(axis=0)
        ss = ss.reshape(f, C).sum(axis=0)
    mean = s / M
    var = jnp.maximum(ss / M - mean * mean, 0.0)     # biased batch variance
    scale = gamma / jnp.sqrt(var + EPS)
    shift = beta - mean * scale
    return scale, shift


def _bn_affine_kernel(x_ref, scale_ref, shift_ref, o_ref, *, relu):
    y = x_ref[...] * scale_ref[...] + shift_ref[...]
    if relu:
        y = jnp.maximum(y, 0.0)
    o_ref[...] = y


def _bn_add_relu_kernel(x_ref, scale_ref, shift_ref, res_ref, o_ref):
    y = x_ref[...] * scale_ref[...] + shift_ref[...] + res_ref[...]
    o_ref[...] = jnp.maximum(y, 0.0)


def _bn_apply(x2d, scale, shift, relu, res2d=None):
    M, C = x2d.shape
    xf, f = _fold_cols(x2d)
    Mf, Cf = xf.shape
    scale_f = jnp.tile(scale, f).reshape(1, Cf).astype(jnp.float32)
    shift_f = jnp.tile(shift, f).reshape(1, Cf).astype(jnp.float32)
    tm = _row_tile(Mf, Cf)
    row_spec = pl.BlockSpec((tm, Cf), lambda i: (i, 0))
    vec_spec = pl.BlockSpec((1, Cf), lambda i: (0, 0))
    # TODO(synk): add input_output_aliases to update the conv output in place.
    if res2d is None:
        out = pl.pallas_call(
            functools.partial(_bn_affine_kernel, relu=relu),
            out_shape=jax.ShapeDtypeStruct((Mf, Cf), jnp.float32),
            grid=(pl.cdiv(Mf, tm),),
            in_specs=[row_spec, vec_spec, vec_spec],
            out_specs=row_spec,
            compiler_params=pltpu.CompilerParams(
                dimension_semantics=("parallel",)),
        )(xf, scale_f, shift_f)
    else:
        rf, _ = _fold_cols(res2d)
        out = pl.pallas_call(
            _bn_add_relu_kernel,
            out_shape=jax.ShapeDtypeStruct((Mf, Cf), jnp.float32),
            grid=(pl.cdiv(Mf, tm),),
            in_specs=[row_spec, vec_spec, vec_spec, row_spec],
            out_specs=row_spec,
            compiler_params=pltpu.CompilerParams(
                dimension_semantics=("parallel",)),
        )(xf, scale_f, shift_f, rf)
    return out.reshape(M, C)


def apply_bn(x2d, gamma, beta, relu):
    scale, shift = _bn_scale_shift(x2d, gamma, beta)
    return _bn_apply(x2d, scale, shift, relu)


def apply_bn_add_relu(x2d, gamma, beta, res2d):
    scale, shift = _bn_scale_shift(x2d, gamma, beta)
    return _bn_apply(x2d, scale, shift, True, res2d=res2d)


# ----------------------------------------------------------------------------
# MaxPool 3x3, stride 2, pad 1 via parity views (no 9x window stack in HBM)
# ----------------------------------------------------------------------------
def maxpool_3x3_s2_p1(x):
    N, H, W, C = x.shape
    OH = (H + 2 - 3) // 2 + 1
    OW = (W + 2 - 3) // 2 + 1
    neg = jnp.float32(-jnp.inf)
    xp = jnp.pad(x, ((0, 0), (1, 1), (1, 1), (0, 0)), constant_values=neg)
    R, Cc = OH + 1, OW + 1

    def parity(a, r0, c0):
        v = a[:, r0::2, c0::2, :]
        pr, pc = R - v.shape[1], Cc - v.shape[2]
        if pr > 0 or pc > 0:
            v = jnp.pad(v, ((0, 0), (0, max(pr, 0)), (0, max(pc, 0)), (0, 0)),
                        constant_values=neg)
        return v

    ee = parity(xp, 0, 0)
    eo = parity(xp, 0, 1)
    oe = parity(xp, 1, 0)
    oo = parity(xp, 1, 1)

    def kernel(ee_ref, eo_ref, oe_ref, oo_ref, o_ref):
        ee_v = ee_ref[...]
        eo_v = eo_ref[...]
        oe_v = oe_ref[...]
        oo_v = oo_ref[...]
        m = ee_v[:, 0:OH, 0:OW, :]
        m = jnp.maximum(m, ee_v[:, 0:OH, 1:OW + 1, :])
        m = jnp.maximum(m, ee_v[:, 1:OH + 1, 0:OW, :])
        m = jnp.maximum(m, ee_v[:, 1:OH + 1, 1:OW + 1, :])
        m = jnp.maximum(m, eo_v[:, 0:OH, 0:OW, :])
        m = jnp.maximum(m, eo_v[:, 1:OH + 1, 0:OW, :])
        m = jnp.maximum(m, oe_v[:, 0:OH, 0:OW, :])
        m = jnp.maximum(m, oe_v[:, 0:OH, 1:OW + 1, :])
        m = jnp.maximum(m, oo_v[:, 0:OH, 0:OW, :])
        o_ref[...] = m

    in_spec = pl.BlockSpec((1, R, Cc, C), lambda n: (n, 0, 0, 0))
    out = pl.pallas_call(
        kernel,
        out_shape=jax.ShapeDtypeStruct((N, OH, OW, C), jnp.float32),
        grid=(N,),
        in_specs=[in_spec, in_spec, in_spec, in_spec],
        out_specs=pl.BlockSpec((1, OH, OW, C), lambda n: (n, 0, 0, 0)),
        compiler_params=pltpu.CompilerParams(dimension_semantics=("parallel",)),
    )(ee, eo, oe, oo)
    return out


# ----------------------------------------------------------------------------
# Residual blocks
# ----------------------------------------------------------------------------
def basic_block_fwd(x, p, stride):
    N, H, W, C = x.shape
    if "down_w" in p:
        idm, _ = conv2d_pallas(x, p["down_w"], stride, 0)
        identity = apply_bn(idm, p["down_g"], p["down_b"], relu=False)
    else:
        identity = x.reshape(N * H * W, C)
    o1, s1 = conv2d_pallas(x, p["w1"], stride, 1)
    o1 = apply_bn(o1, p["g1"], p["b1"], relu=True)
    o2, s2 = conv2d_pallas(o1.reshape(s1), p["w2"], 1, 1)
    o2 = apply_bn_add_relu(o2, p["g2"], p["b2"], identity)
    return o2.reshape(s2)


def bottleneck_fwd(x, p, stride):
    N, H, W, C = x.shape
    if "down_w" in p:
        idm, _ = conv2d_pallas(x, p["down_w"], stride, 0)
        identity = apply_bn(idm, p["down_g"], p["down_b"], relu=False)
    else:
        identity = x.reshape(N * H * W, C)
    o1, s1 = conv2d_pallas(x, p["w1"], 1, 0)
    o1 = apply_bn(o1, p["g1"], p["b1"], relu=True)
    o2, s2 = conv2d_pallas(o1.reshape(s1), p["w2"], stride, 1)
    o2 = apply_bn(o2, p["g2"], p["b2"], relu=True)
    o3, s3 = conv2d_pallas(o2.reshape(s2), p["w3"], 1, 0)
    o3 = apply_bn_add_relu(o3, p["g3"], p["b3"], identity)
    return o3.reshape(s3)


# ----------------------------------------------------------------------------
# Parameter init (deterministic, mirrors nn.Module __init__ shapes)
# ----------------------------------------------------------------------------
def _kaiming_conv(key, k, cin, cout):
    fan_out = cout * k * k
    std = (2.0 / fan_out) ** 0.5
    return std * jax.random.normal(key, (k, k, cin, cout), jnp.float32)


def _init_block_params(key, block, inplanes, planes, stride):
    exp = 1 if block == "basic" else 4
    ks = jax.random.split(key, 4)
    p = {}
    if stride != 1 or inplanes != planes * exp:
        p["down_w"] = _kaiming_conv(ks[0], 1, inplanes, planes * exp)
        p["down_g"] = jnp.ones((planes * exp,), jnp.float32)
        p["down_b"] = jnp.zeros((planes * exp,), jnp.float32)
    if block == "basic":
        p["w1"] = _kaiming_conv(ks[1], 3, inplanes, planes)
        p["w2"] = _kaiming_conv(ks[2], 3, planes, planes)
        for i, c in ((1, planes), (2, planes)):
            p[f"g{i}"] = jnp.ones((c,), jnp.float32)
            p[f"b{i}"] = jnp.zeros((c,), jnp.float32)
    else:
        p["w1"] = _kaiming_conv(ks[1], 1, inplanes, planes)
        p["w2"] = _kaiming_conv(ks[2], 3, planes, planes)
        p["w3"] = _kaiming_conv(ks[3], 1, planes, 4 * planes)
        for i, c in ((1, planes), (2, planes), (3, 4 * planes)):
            p[f"g{i}"] = jnp.ones((c,), jnp.float32)
            p[f"b{i}"] = jnp.zeros((c,), jnp.float32)
    return p


def init_resnet_params(key, block, layer_cfg, num_classes):
    exp = 1 if block == "basic" else 4
    keys = jax.random.split(key, 3 + len(layer_cfg))
    params = {
        "conv1_w": _kaiming_conv(keys[0], 7, 3, 64),
        "bn1_g": jnp.ones((64,), jnp.float32),
        "bn1_b": jnp.zeros((64,), jnp.float32),
        "layers": [],
    }
    inplanes = 64
    plane_cfg = [64, 128, 256, 512]
    for li, (planes, nblocks) in enumerate(zip(plane_cfg, layer_cfg)):
        first_stride = 1 if li == 0 else 2
        bkeys = jax.random.split(keys[1 + li], nblocks)
        blocks = []
        for bi in range(nblocks):
            s = first_stride if bi == 0 else 1
            blocks.append((_init_block_params(bkeys[bi], block, inplanes, planes, s), s))
            inplanes = planes * exp
        params["layers"].append(blocks)
    fc_in = 512 * exp
    bound = 1.0 / (fc_in ** 0.5)
    params["fc_w"] = jax.random.uniform(keys[-2], (fc_in, num_classes),
                                        jnp.float32, -bound, bound)
    params["fc_b"] = jax.random.uniform(keys[-1], (num_classes,),
                                        jnp.float32, -bound, bound)
    return params


# ----------------------------------------------------------------------------
# Full forward (matches ResNet._forward_impl)
# ----------------------------------------------------------------------------
def resnet_forward(params, x_nchw, block):
    x = jnp.transpose(x_nchw, (0, 2, 3, 1)).astype(jnp.float32)  # NCHW -> NHWC
    o, shp = conv2d_pallas(x, params["conv1_w"], stride=2, pad=3)
    o = apply_bn(o, params["bn1_g"], params["bn1_b"], relu=True)
    x = maxpool_3x3_s2_p1(o.reshape(shp))
    block_fn = basic_block_fwd if block == "basic" else bottleneck_fwd
    for layer in params["layers"]:
        for bp, s in layer:
            x = block_fn(x, bp, s)
    feat = jnp.mean(x, axis=(1, 2))                 # AdaptiveAvgPool2d((1,1)) + squeeze
    logits = matmul_pallas(feat, params["fc_w"]) + params["fc_b"]
    return logits


if __name__ == "__main__":
    key = jax.random.PRNGKey(0)
    pkey, xkey = jax.random.split(key)

    block = "basic"            # BasicBlock; "bottleneck" is also implemented above
    layer_cfg = [1, 1, 1, 1]   # small config (module default `layers` is [3, 4, 6, 3])
    num_classes = 10

    params = init_resnet_params(pkey, block, layer_cfg, num_classes)
    x = jax.random.normal(xkey, (2, 3, 32, 32), jnp.float32)  # NCHW, like PyTorch

    logits = resnet_forward(params, x, block)
    jax.block_until_ready(logits)
    assert logits.shape == (2, num_classes)
    assert bool(jnp.all(jnp.isfinite(logits)))
    print("KERNEL_OK")
</pallas_src>

<mosaic_0001>
module attributes {stable_mosaic.version = 11 : i64} {
  func.func @_matmul_kernel(%arg0: i32, %arg1: i32, %arg2: i32, %arg3: memref<256x147xbf16, #tpu.memory_space<vmem>>, %arg4: memref<147x64xbf16, #tpu.memory_space<vmem>>, %arg5: memref<256x64xf32, #tpu.memory_space<vmem>>) attributes {dimension_semantics = [#tpu.dimension_semantics<parallel>, #tpu.dimension_semantics<parallel>, #tpu.dimension_semantics<arbitrary>], iteration_bounds = array<i64: 2, 1, 1>, scalar_prefetch = 0 : i64, scratch_operands = 0 : i64, tpu.core_type = #tpu.core_type<tc>, window_params = [{transform_indices = @transform_0, window_bounds = array<i64: 256, 147>}, {transform_indices = @transform_1, window_bounds = array<i64: 147, 64>}, {transform_indices = @transform_2, window_bounds = array<i64: 256, 64>}]} {
    %c0_i32 = arith.constant 0 : i32
    %0 = arith.cmpi eq, %arg2, %c0_i32 : i32
    %1 = arith.extui %0 : i1 to i32
    %c0_i32_0 = arith.constant 0 : i32
    %2 = arith.cmpi ne, %1, %c0_i32_0 : i32
    scf.if %2 {
      %cst_8 = arith.constant 0.000000e+00 : f32
      %9 = vector.broadcast %cst_8 : f32 to vector<256x64xf32>
      %c0_9 = arith.constant 0 : index
      %c0_10 = arith.constant 0 : index
      %10 = vector.load %arg5[%c0_9, %c0_10] : memref<256x64xf32, #tpu.memory_space<vmem>>, vector<256x64xf32>
      tpu.vector_store %arg5[%c0_9, %c0_10], %9 {strides = array<i32>} : memref<256x64xf32, #tpu.memory_space<vmem>>, vector<256x64xf32>,
    } else {
    }
    %c0 = arith.constant 0 : index
    %c0_1 = arith.constant 0 : index
    %3 = vector.load %arg5[%c0, %c0_1] : memref<256x64xf32, #tpu.memory_space<vmem>>, vector<256x64xf32>
    %c0_2 = arith.constant 0 : index
    %c0_3 = arith.constant 0 : index
    %4 = vector.load %arg3[%c0_2, %c0_3] : memref<256x147xbf16, #tpu.memory_space<vmem>>, vector<256x147xbf16>
    %c0_4 = arith.constant 0 : index
    %c0_5 = arith.constant 0 : index
    %5 = vector.load %arg4[%c0_4, %c0_5] : memref<147x64xbf16, #tpu.memory_space<vmem>>, vector<147x64xbf16>
    %cst = arith.constant dense<0.000000e+00> : vector<256x64xf32>
    %6 = tpu.matmul %4, %5, %cst {dimension_numbers = #tpu.dot_dimension_numbers<[1], [0], [0], [1], [0, 0, 1, 1], [], []>} : vector<256x147xbf16>, vector<147x64xbf16>, vector<256x64xf32> -> vector<256x64xf32>
    %7 = arith.addf %3, %6 : vector<256x64xf32>
    %c0_6 = arith.constant 0 : index
    %c0_7 = arith.constant 0 : index
    %8 = vector.load %arg5[%c0_6, %c0_7] : memref<256x64xf32, #tpu.memory_space<vmem>>, vector<256x64xf32>
    tpu.vector_store %arg5[%c0_6, %c0_7], %7 {strides = array<i32>} : memref<256x64xf32, #tpu.memory_space<vmem>>, vector<256x64xf32>,
    return
  }
  func.func @transform_0(%arg0: i32, %arg1: i32, %arg2: i32) -> (i32, i32) {
    %c0_i32 = arith.constant 0 : i32
    return %arg0, %arg2 : i32, i32
  }
  func.func @transform_1(%arg0: i32, %arg1: i32, %arg2: i32) -> (i32, i32) {
    %c0_i32 = arith.constant 0 : i32
    return %arg2, %arg1 : i32, i32
  }
  func.func @transform_2(%arg0: i32, %arg1: i32, %arg2: i32) -> (i32, i32) {
    %c0_i32 = arith.constant 0 : i32
    return %arg0, %arg1 : i32, i32
  }
}

</mosaic_0001>

<bundles_post_ra>
// kernel: tpu_custom_call.1
= control target key start
LH: loop header
LB: loop body
LE: loop exit
PB: predicated region body
PF: predicated region fallthrough
CT: control target
= control target key end

     0   :  { %s1151_s9 = smov 0   ;;  %s1153_s10 = smov 0   ;;  %s1446_s0 = inlined_call_operand.vmem [shape: bf16[512,147], index: 0, kind: input, shape index: {}]   ;;  %s1447_s1 = inlined_call_operand.vmem [shape: bf16[147,64], index: 1, kind: input, shape index: {}]   ;;  %s1448_s2 = inlined_call_operand.vmem [shape: f32[512,64], index: 2, kind: output, shape index: {}]  }
   0x1   :  { %s1155_s11 = smov 0  }
   0x2 LB: > { %s31_s12 = sadd.s32 1, %s1127_s10  ;;  %p937_p0 = scmp.ge.s32.totalorder %s1131_s11, 1  ;;  %s1131_s11 = sphi %s1155_s11, %s12_s11   ;;  %s1127_s10 = sphi %s1153_s10, %s1450_s10   ;;  %s1123_s9 = sphi %s1151_s9, %s1449_s9  }
   0x3   : > { %p33_p1 = scmp.ge.s32.totalorder %s31_s12, 2  ;;  %p158_p2 = scmp.lt.s32.totalorder %s1131_s11, 3 }
   0x5   : > { %s1452_s12 = smov (%p33_p1, %s31_s12), 0  ;;  %p159_p3 = pnand %p937_p0, %p158_p2 }
   0x6   : > { %s938_s19 = sshll.u32 (!%p159_p3), %s1123_s9, 5 }
   0x7   : > { %162 = sbr.rel (%p159_p3) target bundleno = 309 (0x135), region = 28  ;;  %p198_p4 = scmp.lt.s32.totalorder (!%p159_p3), %s938_s19, 63 }
   0xc   : > { %v1051_v0 = vld [vmem:[%s1447_s1 + $0x38] sm:$0xff]   ;;  %v1133_v1 = vmov 0   ;;  %v1052_v2 = vld [vmem:[%s1447_s1 + $0x30] sm:$0xff]   ;;  %v1053_v3 = vld [vmem:[%s1447_s1 + $0x28] sm:$0xff]   ;;  %s1454_s19 = smov (!%p198_p4, %s938_s19), 63  ;;  %vm231_vm0 = vcmask 523264  }
   0xd   : > { %604 = vmatprep.subr.bf16.mxu0 %v1133_v1  ;;  %1004 = vmatprep.subr.bf16.mxu1 %v1133_v1  ;;  %v1054_v4 = vld [vmem:[%s1447_s1 + $0x20] sm:$0xff]   ;;  %s1003_s22 = sshll.u32 %s1454_s19, 3  ;;  %v1055_v5 = vld [vmem:[%s1447_s1 + $0x18] sm:$0xff]   ;;  %vm548_vm1 = vcmask 154624   ;;  %v1134_v6 = vmov 0.0   ;;  %v1056_v9 = vld [vmem:[%s1447_s1 + $0x10] sm:$0xff]  }
   0xe   : > { %605 = vmatpush1.bf16.msra.mxu0 %v1051_v0  ;;  %1014 = vmatpush1.bf16.msra.mxu1 %v1051_v0  ;;  %s1192_s25 = scalar_lea.vmem %s1446_s0, %s1003_s22  ;;  %s1197_s28 = scalar_lea.vmem %s1448_s2, %s1003_s22  ;;  %vm597_vm2 = vcmask 1040384   ;;  %v1057_v10 = vld [vmem:[%s1447_s1 + $0x8] sm:$0xff]   ;;  %vm598_vm3 = vcmask 1041408   ;;  %v1135_v11 = vmov 65535   ;;  %v1058_v13 = vld [vmem:[%s1447_s1] sm:$0xff]  }
   0xf   : > { %606 = vmatprep.subr.bf16.mxu0 %v1133_v1  ;;  %1005 = vmatprep.subr.bf16.mxu1 %v1133_v1  ;;  %232 = vst.msk [vmem:[%s1197_s28] sm:$0xff] %vm231_vm0, %v1134_v6  ;;  %233 = vst.msk [vmem:[%s1197_s28 + $0x8] sm:$0xff] %vm231_vm0, %v1134_v6  ;;  %v1063_v7 = vld [vmem:[%s1192_s25 + $0x4] ss:$8 sps:$4 sm:$0xff]   ;;  %v599_v12 = vsel %vm597_vm2, 4294967295, %v1135_v11 }
  0x10   : > { %234 = vst.msk [vmem:[%s1197_s28 + $0x10] sm:$0xff] %vm231_vm0, %v1134_v6  ;;  %235 = vst.msk [vmem:[%s1197_s28 + $0x18] sm:$0xff] %vm231_vm0, %v1134_v6  ;;  %v1066_v8 = vld [vmem:[%s1192_s25 + $0x84] ss:$8 sps:$4 sm:$0xff]   ;;  %985 = vmatprep.mubr.msk.bf16.mxu0 %vm548_vm1, %v1063_v7  ;;  %v600_v15 = vsel %vm598_vm3, %v599_v12, 0 }
  0x11   : > { %236 = vst.msk [vmem:[%s1197_s28 + $0x20] sm:$0xff] %vm231_vm0, %v1134_v6  ;;  %237 = vst.msk [vmem:[%s1197_s28 + $0x28] sm:$0xff] %vm231_vm0, %v1134_v6  ;;  %993 = vmatprep.mubr.msk.bf16.mxu1 %vm548_vm1, %v1066_v8  ;;  %v1059_v14 = vld [vmem:[%s1447_s1 + $0x48] ss:$0 sps:$4 sm:$0x33]   ;;  %v1060_v17 = vld [vmem:[%s1447_s1 + $0x40] sm:$0xff]  }
  0x12   : > { %607 = vmatpush1.bf16.msra.mxu0 %v1052_v2  ;;  %1015 = vmatpush1.bf16.msra.mxu1 %v1052_v2  ;;  %238 = vst.msk [vmem:[%s1197_s28 + $0x30] sm:$0xff] %vm231_vm0, %v1134_v6  ;;  %239 = vst.msk [vmem:[%s1197_s28 + $0x38] sm:$0xff] %vm231_vm0, %v1134_v6  ;;  %v602_v16 = vand.u32 %v1059_v14, %v600_v15  ;;  %v1061_v18 = vld [vmem:[%s1192_s25] ss:$8 sps:$4 sm:$0xff]   ;;  %v1067_v20 = vld [vmem:[%s1192_s25 + $0x14] ss:$8 sps:$4 sm:$0xff]  }
  0x13   : > { %608 = vmatprep.subr.bf16.mxu0 %v1133_v1  ;;  %1006 = vmatprep.subr.bf16.mxu1 %v1133_v1  ;;  %240 = vst.msk [vmem:[%s1197_s28 + $0x40] sm:$0xff] %vm231_vm0, %v1134_v6  ;;  %241 = vst.msk [vmem:[%s1197_s28 + $0x48] sm:$0xff] %vm231_vm0, %v1134_v6  ;;  %v1064_v19 = vld [vmem:[%s1192_s25 + $0x80] ss:$8 sps:$4 sm:$0xff]   ;;  %v1069_v21 = vld [vmem:[%s1192_s25 + $0x94] ss:$8 sps:$4 sm:$0xff]  }
  0x14   : > { %242 = vst.msk [vmem:[%s1197_s28 + $0x50] sm:$0xff] %vm231_vm0, %v1134_v6  ;;  %243 = vst.msk [vmem:[%s1197_s28 + $0x58] sm:$0xff] %vm231_vm0, %v1134_v6  ;;  %v1071_v22 = vld [vmem:[%s1192_s25 + $0x10] ss:$8 sps:$4 sm:$0xff]   ;;  %v1073_v24 = vld [vmem:[%s1192_s25 + $0x24] ss:$8 sps:$4 sm:$0xff]  }
  0x15   : > { %244 = vst.msk [vmem:[%s1197_s28 + $0x60] sm:$0xff] %vm231_vm0, %v1134_v6  ;;  %245 = vst.msk [vmem:[%s1197_s28 + $0x68] sm:$0xff] %vm231_vm0, %v1134_v6  ;;  %v1072_v23 = vld [vmem:[%s1192_s25 + $0x90] ss:$8 sps:$4 sm:$0xff]   ;;  %v1075_v25 = vld [vmem:[%s1192_s25 + $0xa4] ss:$8 sps:$4 sm:$0xff]  }
  0x16   : > { %609 = vmatpush1.bf16.msra.mxu0 %v1053_v3  ;;  %1016 = vmatpush1.bf16.msra.mxu1 %v1053_v3  ;;  %246 = vst.msk [vmem:[%s1197_s28 + $0x70] sm:$0xff] %vm231_vm0, %v1134_v6  ;;  %247 = vst.msk [vmem:[%s1197_s28 + $0x78] sm:$0xff] %vm231_vm0, %v1134_v6  ;;  %v1077_v26 = vld [vmem:[%s1192_s25 + $0x20] ss:$8 sps:$4 sm:$0xff]   ;;  %v1079_v28 = vld [vmem:[%s1192_s25 + $0x34] ss:$8 sps:$4 sm:$0xff]  }
  0x17   : > { %610 = vmatprep.subr.bf16.mxu0 %v1133_v1  ;;  %1007 = vmatprep.subr.bf16.mxu1 %v1133_v1  ;;  %248 = vst.msk [vmem:[%s1197_s28 + $0x80] sm:$0xff] %vm231_vm0, %v1134_v6  ;;  %249 = vst.msk [vmem:[%s1197_s28 + $0x88] sm:$0xff] %vm231_vm0, %v1134_v6  ;;  %v1078_v27 = vld [vmem:[%s1192_s25 + $0xa0] ss:$8 sps:$4 sm:$0xff]   ;;  %v1081_v29 = vld [vmem:[%s1192_s25 + $0xb4] ss:$8 sps:$4 sm:$0xff]  }
  0x18   : > { %250 = vst.msk [vmem:[%s1197_s28 + $0x90] sm:$0xff] %vm231_vm0, %v1134_v6  ;;  %251 = vst.msk [vmem:[%s1197_s28 + $0x98] sm:$0xff] %vm231_vm0, %v1134_v6  ;;  %v1083_v30 = vld [vmem:[%s1192_s25 + $0x30] ss:$8 sps:$4 sm:$0xff]   ;;  %v1085_v32 = vld [vmem:[%s1192_s25 + $0x44] ss:$8 sps:$4 sm:$0xff]  }
  0x19   : > { %252 = vst.msk [vmem:[%s1197_s28 + $0xa0] sm:$0xff] %vm231_vm0, %v1134_v6  ;;  %253 = vst.msk [vmem:[%s1197_s28 + $0xa8] sm:$0xff] %vm231_vm0, %v1134_v6  ;;  %v1084_v31 = vld [vmem:[%s1192_s25 + $0xb0] ss:$8 sps:$4 sm:$0xff]   ;;  %v1087_v33 = vld [vmem:[%s1192_s25 + $0xc4] ss:$8 sps:$4 sm:$0xff]  }
  0x1a   : > { %254 = vst.msk [vmem:[%s1197_s28 + $0xb0] sm:$0xff] %vm231_vm0, %v1134_v6  ;;  %255 = vst.msk [vmem:[%s1197_s28 + $0xb8] sm:$0xff] %vm231_vm0, %v1134_v6  ;;  %611 = vmatpush1.bf16.msra.mxu0 %v1054_v4  ;;  %1017 = vmatpush1.bf16.msra.mxu1 %v1054_v4  ;;  %v1089_v34 = vld [vmem:[%s1192_s25 + $0x40] ss:$8 sps:$4 sm:$0xff]   ;;  %v1091_v36 = vld [vmem:[%s1192_s25 + $0x54] ss:$8 sps:$4 sm:$0xff]  }
  0x1b   : > { %256 = vst.msk [vmem:[%s1197_s28 + $0xc0] sm:$0xff] %vm231_vm0, %v1134_v6  ;;  %257 = vst.msk [vmem:[%s1197_s28 + $0xc8] sm:$0xff] %vm231_vm0, %v1134_v6  ;;  %612 = vmatprep.subr.bf16.mxu0 %v1133_v1  ;;  %1008 = vmatprep.subr.bf16.mxu1 %v1133_v1  ;;  %v1090_v35 = vld [vmem:[%s1192_s25 + $0xc0] ss:$8 sps:$4 sm:$0xff]   ;;  %v1093_v37 = vld [vmem:[%s1192_s25 + $0xd4] ss:$8 sps:$4 sm:$0xff]  }
  0x1c   : > { %258 = vst.msk [vmem:[%s1197_s28 + $0xd0] sm:$0xff] %vm231_vm0, %v1134_v6  ;;  %259 = vst.msk [vmem:[%s1197_s28 + $0xd8] sm:$0xff] %vm231_vm0, %v1134_v6  ;;  %v1095_v38 = vld [vmem:[%s1192_s25 + $0x50] ss:$8 sps:$4 sm:$0xff]   ;;  %v1097_v40 = vld [vmem:[%s1192_s25 + $0x64] ss:$8 sps:$4 sm:$0xff]  }
  0x1d   : > { %260 = vst.msk [vmem:[%s1197_s28 + $0xe0] sm:$0xff] %vm231_vm0, %v1134_v6  ;;  %261 = vst.msk [vmem:[%s1197_s28 + $0xe8] sm:$0xff] %vm231_vm0, %v1134_v6  ;;  %v1096_v39 = vld [vmem:[%s1192_s25 + $0xd0] ss:$8 sps:$4 sm:$0xff]   ;;  %v1099_v41 = vld [vmem:[%s1192_s25 + $0xe4] ss:$8 sps:$4 sm:$0xff]  }
  0x1e   : > { %262 = vst.msk [vmem:[%s1197_s28 + $0xf0] sm:$0xff] %vm231_vm0, %v1134_v6  ;;  %263 = vst.msk [vmem:[%s1197_s28 + $0xf8] sm:$0xff] %vm231_vm0, %v1134_v6  ;;  %613 = vmatpush1.bf16.msra.mxu0 %v1055_v5  ;;  %1018 = vmatpush1.bf16.msra.mxu1 %v1055_v5  ;;  %v1101_v42 = vld [vmem:[%s1192_s25 + $0x60] ss:$8 sps:$4 sm:$0xff]   ;;  %v1103_v44 = vld [vmem:[%s1192_s25 + $0x74] ss:$8 sps:$4 sm:$0xff]  }
  0x1f   : > { %614 = vmatprep.subr.bf16.mxu0 %v1133_v1  ;;  %1009 = vmatprep.subr.bf16.mxu1 %v1133_v1  ;;  %v1102_v43 = vld [vmem:[%s1192_s25 + $0xe0] ss:$8 sps:$4 sm:$0xff]   ;;  %v1105_v45 = vld [vmem:[%s1192_s25 + $0xf4] ss:$8 sps:$4 sm:$0xff]   ;;  %v1107_v46 = vld [vmem:[%s1192_s25 + $0x70] ss:$8 sps:$4 sm:$0xff]  }
  0x20   : > { %v1108_v47 = vld [vmem:[%s1192_s25 + $0xf0] ss:$8 sps:$4 sm:$0xff]   ;;  %v264_v48 = vld [vmem:[%s1197_s28] sm:$0xff]  ;;  %v265_v56 = vld [vmem:[%s1197_s28 + $0x8] sm:$0xff] }
  0x21   : > { %v280_v49 = vld [vmem:[%s1197_s28 + $0x80] sm:$0xff]  ;;  %v281_v57 = vld [vmem:[%s1197_s28 + $0x88] sm:$0xff]  ;;  %v266_v0 = vld [vmem:[%s1197_s28 + $0x10] sm:$0xff] }
  0x22   : > { %615 = vmatpush1.bf16.msra.mxu0 %v1056_v9  ;;  %1019 = vmatpush1.bf16.msra.mxu1 %v1056_v9  ;;  %v267_v8 = vld [vmem:[%s1197_s28 + $0x18] sm:$0xff] }
  0x23   : > { %616 = vmatprep.subr.bf16.mxu0 %v1133_v1  ;;  %1010 = vmatprep.subr.bf16.mxu1 %v1133_v1  ;;  %v283_v9 = vld [vmem:[%s1197_s28 + $0x98] sm:$0xff] }
  0x26   : > { %617 = vmatpush1.bf16.msra.mxu0 %v1057_v10  ;;  %1020 = vmatpush1.bf16.msra.mxu1 %v1057_v10 }
  0x27   : > { %618 = vmatprep.subr.bf16.mxu0 %v1133_v1  ;;  %1011 = vmatprep.subr.bf16.mxu1 %v1133_v1 }
  0x2a   : > { %619 = vmatpush1.bf16.msra.mxu0 %v1058_v13  ;;  %1021 = vmatpush1.bf16.msra.mxu1 %v1058_v13 }
  0x2b   : > { %632 = vmatprep.subr.bf16.mxu0 %v1133_v1  ;;  %1012 = vmatprep.subr.bf16.mxu1 %v1133_v1 }
  0x2e   : > { %633 = vmatpush2.bf16.msra.mxu0 %v602_v16  ;;  %1022 = vmatpush2.bf16.msra.mxu1 %v602_v16  ;;  %v268_v16 = vld [vmem:[%s1197_s28 + $0x20] sm:$0xff] }
  0x2f   : > { %634 = vmatprep.subr.bf16.mxu0 %v1133_v1  ;;  %1013 = vmatprep.subr.bf16.mxu1 %v1133_v1  ;;  %v282_v1 = vld [vmem:[%s1197_s28 + $0x90] sm:$0xff] }
  0x32   : > { %635 = vmatpush2.bf16.msra.mxu0 %v1060_v17  ;;  %1023 = vmatpush2.bf16.msra.mxu1 %v1060_v17  ;;  %v284_v17 = vld [vmem:[%s1197_s28 + $0xa0] sm:$0xff] }
  0x35   : > { %637 = vmatmul.mubr.bf16.vlgmr.msra.gmra.mxu0 %v1061_v18  ;;  %701 = vmatmul.mubr.bf16.vlgmr.msra.gmra.mxu1 %v1064_v19 }
  0x36   : > { %986 = vmatprep.mubr.msk.bf16.mxu0 %vm548_vm1, %v1067_v20  ;;  %994 = vmatprep.mubr.msk.bf16.mxu1 %vm548_vm1, %v1069_v21 }
  0x3d   : > { %645 = vmatmul.mubr.bf16.gmra.mxu0 %v1071_v22  ;;  %709 = vmatmul.mubr.bf16.gmra.mxu1 %v1072_v23 }
  0x3e   : > { %987 = vmatprep.mubr.msk.bf16.mxu0 %vm548_vm1, %v1073_v24  ;;  %995 = vmatprep.mubr.msk.bf16.mxu1 %vm548_vm1, %v1075_v25  ;;  %v269_v24 = vld [vmem:[%s1197_s28 + $0x28] sm:$0xff] }
  0x3f   : > { %v285_v25 = vld [vmem:[%s1197_s28 + $0xa8] sm:$0xff] }
  0x45   : > { %653 = vmatmul.mubr.bf16.gmra.mxu0 %v1077_v26  ;;  %717 = vmatmul.mubr.bf16.gmra.mxu1 %v1078_v27 }
  0x46   : > { %988 = vmatprep.mubr.msk.bf16.mxu0 %vm548_vm1, %v1079_v28  ;;  %996 = vmatprep.mubr.msk.bf16.mxu1 %vm548_vm1, %v1081_v29 }
  0x4d   : > { %661 = vmatmul.mubr.bf16.gmra.mxu0 %v1083_v30  ;;  %725 = vmatmul.mubr.bf16.gmra.mxu1 %v1084_v31 }
  0x4e   : > { %989 = vmatprep.mubr.msk.bf16.mxu0 %vm548_vm1, %v1085_v32  ;;  %997 = vmatprep.mubr.msk.bf16.mxu1 %vm548_vm1, %v1087_v33  ;;  %v270_v32 = vld [vmem:[%s1197_s28 + $0x30] sm:$0xff] }
  0x4f   : > { %v286_v33 = vld [vmem:[%s1197_s28 + $0xb0] sm:$0xff] }
  0x55   : > { %669 = vmatmul.mubr.bf16.gmra.mxu0 %v1089_v34  ;;  %733 = vmatmul.mubr.bf16.gmra.mxu1 %v1090_v35 }
  0x56   : > { %990 = vmatprep.mubr.msk.bf16.mxu0 %vm548_vm1, %v1091_v36  ;;  %998 = vmatprep.mubr.msk.bf16.mxu1 %vm548_vm1, %v1093_v37 }
  0x5d   : > { %677 = vmatmul.mubr.bf16.gmra.mxu0 %v1095_v38  ;;  %741 = vmatmul.mubr.bf16.gmra.mxu1 %v1096_v39 }
  0x5e   : > { %991 = vmatprep.mubr.msk.bf16.mxu0 %vm548_vm1, %v1097_v40  ;;  %999 = vmatprep.mubr.msk.bf16.mxu1 %vm548_vm1, %v1099_v41  ;;  %v271_v40 = vld [vmem:[%s1197_s28 + $0x38] sm:$0xff] }
  0x5f   : > { %v287_v41 = vld [vmem:[%s1197_s28 + $0xb8] sm:$0xff] }
  0x65   : > { %685 = vmatmul.mubr.bf16.gmra.mxu0 %v1101_v42  ;;  %749 = vmatmul.mubr.bf16.gmra.mxu1 %v1102_v43 }
  0x66   : > { %992 = vmatprep.mubr.msk.bf16.mxu0 %vm548_vm1, %v1103_v44  ;;  %1000 = vmatprep.mubr.msk.bf16.mxu1 %vm548_vm1, %v1105_v45 }
  0x6d   : > { %693 = vmatmul.mubr.bf16.gmra.mxu0 %v1107_v46  ;;  %757 = vmatmul.mubr.bf16.gmra.mxu1 %v1108_v47 }
  0xf5   : > { %v638_v50 = vpop.f32.mrf.mxu0  ;;  %v702_v51 = vpop.f32.mrf.mxu1 }
  0xf6   : > { %v765_v52 = vadd.f32 %v638_v50, %v264_v48  ;;  %v781_v53 = vadd.f32 %v702_v51, %v280_v49  ;;  %v272_v48 = vld [vmem:[%s1197_s28 + $0x40] sm:$0xff] }
  0xf7   : > { %v640_v54 = vpop.f32.mrf.mxu0  ;;  %v704_v55 = vpop.f32.mrf.mxu1  ;;  %v288_v49 = vld [vmem:[%s1197_s28 + $0xc0] sm:$0xff] }
  0xf8   : > { %798 = vst.msk [vmem:[%s1197_s28] sm:$0xff] %vm231_vm0, %v765_v52  ;;  %814 = vst.msk [vmem:[%s1197_s28 + $0x80] sm:$0xff] %vm231_vm0, %v781_v53 }
  0xf9   : > { %v641_v58 = vpop.f32.mrf.mxu0  ;;  %v705_v59 = vpop.f32.mrf.mxu1 }
  0xfa   : > { %v766_v60 = vadd.f32 %v641_v58, %v265_v56  ;;  %v782_v61 = vadd.f32 %v705_v59, %v281_v57  ;;  %v273_v56 = vld [vmem:[%s1197_s28 + $0x48] sm:$0xff] }
  0xfb   : > { %v643_v62 = vpop.f32.mrf.mxu0  ;;  %v707_v63 = vpop.f32.mrf.mxu1  ;;  %v289_v57 = vld [vmem:[%s1197_s28 + $0xc8] sm:$0xff] }
  0xfc   : > { %799 = vst.msk [vmem:[%s1197_s28 + $0x8] sm:$0xff] %vm231_vm0, %v766_v60  ;;  %815 = vst.msk [vmem:[%s1197_s28 + $0x88] sm:$0xff] %vm231_vm0, %v782_v61 }
  0xfd   : > { %v646_v2 = vpop.f32.mrf.mxu0  ;;  %v710_v3 = vpop.f32.mrf.mxu1 }
  0xfe   : > { %v767_v4 = vadd.f32 %v646_v2, %v266_v0  ;;  %v783_v5 = vadd.f32 %v710_v3, %v282_v1  ;;  %v274_v0 = vld [vmem:[%s1197_s28 + $0x50] sm:$0xff] }
  0xff   : > { %v648_v6 = vpop.f32.mrf.mxu0  ;;  %v712_v7 = vpop.f32.mrf.mxu1  ;;  %v290_v1 = vld [vmem:[%s1197_s28 + $0xd0] sm:$0xff] }
 0x100   : > { %800 = vst.msk [vmem:[%s1197_s28 + $0x10] sm:$0xff] %vm231_vm0, %v767_v4  ;;  %816 = vst.msk [vmem:[%s1197_s28 + $0x90] sm:$0xff] %vm231_vm0, %v783_v5 }
 0x101   : > { %v649_v10 = vpop.f32.mrf.mxu0  ;;  %v713_v11 = vpop.f32.mrf.mxu1 }
 0x102   : > { %v768_v12 = vadd.f32 %v649_v10, %v267_v8  ;;  %v784_v13 = vadd.f32 %v713_v11, %v283_v9  ;;  %v275_v8 = vld [vmem:[%s1197_s28 + $0x58] sm:$0xff] }
 0x103   : > { %v651_v14 = vpop.f32.mrf.mxu0  ;;  %v715_v15 = vpop.f32.mrf.mxu1  ;;  %v291_v9 = vld [vmem:[%s1197_s28 + $0xd8] sm:$0xff] }
 0x104   : > { %801 = vst.msk [vmem:[%s1197_s28 + $0x18] sm:$0xff] %vm231_vm0, %v768_v12  ;;  %817 = vst.msk [vmem:[%s1197_s28 + $0x98] sm:$0xff] %vm231_vm0, %v784_v13 }
 0x105   : > { %v654_v18 = vpop.f32.mrf.mxu0  ;;  %v718_v19 = vpop.f32.mrf.mxu1 }
 0x106   : > { %v769_v20 = vadd.f32 %v654_v18, %v268_v16  ;;  %v785_v21 = vadd.f32 %v718_v19, %v284_v17  ;;  %v276_v16 = vld [vmem:[%s1197_s28 + $0x60] sm:$0xff] }
 0x107   : > { %v656_v22 = vpop.f32.mrf.mxu0  ;;  %v720_v23 = vpop.f32.mrf.mxu1  ;;  %v292_v17 = vld [vmem:[%s1197_s28 + $0xe0] sm:$0xff] }
 0x108   : > { %802 = vst.msk [vmem:[%s1197_s28 + $0x20] sm:$0xff] %vm231_vm0, %v769_v20  ;;  %818 = vst.msk [vmem:[%s1197_s28 + $0xa0] sm:$0xff] %vm231_vm0, %v785_v21 }
 0x109   : > { %v657_v26 = vpop.f32.mrf.mxu0  ;;  %v721_v27 = vpop.f32.mrf.mxu1 }
 0x10a   : > { %v770_v28 = vadd.f32 %v657_v26, %v269_v24  ;;  %v786_v29 = vadd.f32 %v721_v27, %v285_v25  ;;  %v277_v24 = vld [vmem:[%s1197_s28 + $0x68] sm:$0xff] }
 0x10b   : > { %v659_v30 = vpop.f32.mrf.mxu0  ;;  %v723_v31 = vpop.f32.mrf.mxu1  ;;  %v293_v25 = vld [vmem:[%s1197_s28 + $0xe8] sm:$0xff] }
 0x10c   : > { %803 = vst.msk [vmem:[%s1197_s28 + $0x28] sm:$0xff] %vm231_vm0, %v770_v28  ;;  %819 = vst.msk [vmem:[%s1197_s28 + $0xa8] sm:$0xff] %vm231_vm0, %v786_v29 }
 0x10d   : > { %v662_v34 = vpop.f32.mrf.mxu0  ;;  %v726_v35 = vpop.f32.mrf.mxu1 }
 0x10e   : > { %v771_v36 = vadd.f32 %v662_v34, %v270_v32  ;;  %v787_v37 = vadd.f32 %v726_v35, %v286_v33  ;;  %v278_v32 = vld [vmem:[%s1197_s28 + $0x70] sm:$0xff] }
 0x10f   : > { %v664_v38 = vpop.f32.mrf.mxu0  ;;  %v728_v39 = vpop.f32.mrf.mxu1  ;;  %v294_v33 = vld [vmem:[%s1197_s28 + $0xf0] sm:$0xff] }
 0x110   : > { %804 = vst.msk [vmem:[%s1197_s28 + $0x30] sm:$0xff] %vm231_vm0, %v771_v36  ;;  %820 = vst.msk [vmem:[%s1197_s28 + $0xb0] sm:$0xff] %vm231_vm0, %v787_v37 }
 0x111   : > { %v665_v42 = vpop.f32.mrf.mxu0  ;;  %v729_v43 = vpop.f32.mrf.mxu1 }
 0x112   : > { %v772_v44 = vadd.f32 %v665_v42, %v271_v40  ;;  %v788_v45 = vadd.f32 %v729_v43, %v287_v41  ;;  %v279_v40 = vld [vmem:[%s1197_s28 + $0x78] sm:$0xff] }
 0x113   : > { %v667_v46 = vpop.f32.mrf.mxu0  ;;  %v731_v47 = vpop.f32.mrf.mxu1  ;;  %v295_v41 = vld [vmem:[%s1197_s28 + $0xf8] sm:$0xff] }
 0x114   : > { %805 = vst.msk [vmem:[%s1197_s28 + $0x38] sm:$0xff] %vm231_vm0, %v772_v44  ;;  %821 = vst.msk [vmem:[%s1197_s28 + $0xb8] sm:$0xff] %vm231_vm0, %v788_v45 }
 0x115   : > { %v670_v50 = vpop.f32.mrf.mxu0  ;;  %v734_v51 = vpop.f32.mrf.mxu1 }
 0x116   : > { %v773_v52 = vadd.f32 %v670_v50, %v272_v48  ;;  %v789_v53 = vadd.f32 %v734_v51, %v288_v49 }
 0x117   : > { %v672_v54 = vpop.f32.mrf.mxu0  ;;  %v736_v55 = vpop.f32.mrf.mxu1 }
 0x118   : > { %806 = vst.msk [vmem:[%s1197_s28 + $0x40] sm:$0xff] %vm231_vm0, %v773_v52  ;;  %822 = vst.msk [vmem:[%s1197_s28 + $0xc0] sm:$0xff] %vm231_vm0, %v789_v53 }
 0x119   : > { %v673_v58 = vpop.f32.mrf.mxu0  ;;  %v737_v59 = vpop.f32.mrf.mxu1 }
 0x11a   : > { %v774_v60 = vadd.f32 %v673_v58, %v273_v56  ;;  %v790_v61 = vadd.f32 %v737_v59, %v289_v57 }
 0x11b   : > { %v675_v62 = vpop.f32.mrf.mxu0  ;;  %v739_v63 = vpop.f32.mrf.mxu1 }
 0x11c   : > { %807 = vst.msk [vmem:[%s1197_s28 + $0x48] sm:$0xff] %vm231_vm0, %v774_v60  ;;  %823 = vst.msk [vmem:[%s1197_s28 + $0xc8] sm:$0xff] %vm231_vm0, %v790_v61 }
 0x11d   : > { %v678_v2 = vpop.f32.mrf.mxu0  ;;  %v742_v3 = vpop.f32.mrf.mxu1 }
 0x11e   : > { %v775_v4 = vadd.f32 %v678_v2, %v274_v0  ;;  %v791_v5 = vadd.f32 %v742_v3, %v290_v1 }
 0x11f   : > { %v680_v6 = vpop.f32.mrf.mxu0  ;;  %v744_v7 = vpop.f32.mrf.mxu1 }
 0x120   : > { %808 = vst.msk [vmem:[%s1197_s28 + $0x50] sm:$0xff] %vm231_vm0, %v775_v4  ;;  %824 = vst.msk [vmem:[%s1197_s28 + $0xd0] sm:$0xff] %vm231_vm0, %v791_v5 }
 0x121   : > { %v681_v10 = vpop.f32.mrf.mxu0  ;;  %v745_v11 = vpop.f32.mrf.mxu1 }
 0x122   : > { %v776_v12 = vadd.f32 %v681_v10, %v275_v8  ;;  %v792_v13 = vadd.f32 %v745_v11, %v291_v9 }
 0x123   : > { %v683_v14 = vpop.f32.mrf.mxu0  ;;  %v747_v15 = vpop.f32.mrf.mxu1 }
 0x124   : > { %809 = vst.msk [vmem:[%s1197_s28 + $0x58] sm:$0xff] %vm231_vm0, %v776_v12  ;;  %825 = vst.msk [vmem:[%s1197_s28 + $0xd8] sm:$0xff] %vm231_vm0, %v792_v13 }
 0x125   : > { %v686_v18 = vpop.f32.mrf.mxu0  ;;  %v750_v19 = vpop.f32.mrf.mxu1 }
 0x126   : > { %v777_v20 = vadd.f32 %v686_v18, %v276_v16  ;;  %v793_v21 = vadd.f32 %v750_v19, %v292_v17 }
 0x127   : > { %v688_v22 = vpop.f32.mrf.mxu0  ;;  %v752_v23 = vpop.f32.mrf.mxu1 }
 0x128   : > { %810 = vst.msk [vmem:[%s1197_s28 + $0x60] sm:$0xff] %vm231_vm0, %v777_v20  ;;  %826 = vst.msk [vmem:[%s1197_s28 + $0xe0] sm:$0xff] %vm231_vm0, %v793_v21 }
 0x129   : > { %v689_v26 = vpop.f32.mrf.mxu0  ;;  %v753_v27 = vpop.f32.mrf.mxu1 }
 0x12a   : > { %v778_v28 = vadd.f32 %v689_v26, %v277_v24  ;;  %v794_v29 = vadd.f32 %v753_v27, %v293_v25 }
 0x12b   : > { %v691_v30 = vpop.f32.mrf.mxu0  ;;  %v755_v31 = vpop.f32.mrf.mxu1 }
 0x12c   : > { %811 = vst.msk [vmem:[%s1197_s28 + $0x68] sm:$0xff] %vm231_vm0, %v778_v28  ;;  %827 = vst.msk [vmem:[%s1197_s28 + $0xe8] sm:$0xff] %vm231_vm0, %v794_v29 }
 0x12d   : > { %v694_v34 = vpop.f32.mrf.mxu0  ;;  %v758_v35 = vpop.f32.mrf.mxu1 }
 0x12e   : > { %v779_v36 = vadd.f32 %v694_v34, %v278_v32  ;;  %v795_v37 = vadd.f32 %v758_v35, %v294_v33 }
 0x12f   : > { %v696_v38 = vpop.f32.mrf.mxu0  ;;  %v760_v39 = vpop.f32.mrf.mxu1 }
 0x130   : > { %812 = vst.msk [vmem:[%s1197_s28 + $0x70] sm:$0xff] %vm231_vm0, %v779_v36  ;;  %828 = vst.msk [vmem:[%s1197_s28 + $0xf0] sm:$0xff] %vm231_vm0, %v795_v37 }
 0x131   : > { %v697_v42 = vpop.f32.mrf.mxu0  ;;  %v761_v43 = vpop.f32.mrf.mxu1 }
 0x132   : > { %v780_v44 = vadd.f32 %v697_v42, %v279_v40  ;;  %v796_v45 = vadd.f32 %v761_v43, %v295_v41 }
 0x133   : > { %v699_v46 = vpop.f32.mrf.mxu0  ;;  %v763_v47 = vpop.f32.mrf.mxu1 }
 0x134   : > { %813 = vst.msk [vmem:[%s1197_s28 + $0x78] sm:$0xff] %vm231_vm0, %v780_v44  ;;  %829 = vst.msk [vmem:[%s1197_s28 + $0xf8] sm:$0xff] %vm231_vm0, %v796_v45 }
 0x135 PF: > { %s12_s11 = sadd.s32 1, %s1131_s11   ;;  %s1449_s9 = smov %s1127_s10 }
 0x136   : > { %p9_p5 = scmp.ge.s32.totalorder %s12_s11, 4   ;;  %s1450_s10 = smov %s1452_s12 }
 0x138   :  { %11 = sbr.rel (!%p9_p5) target bundleno = 2 (0x2), region = 65 }

</bundles_post_ra>
